<compile_context>
chip_gen: v6e
topology: v6e:2x2x1
jax: 0.10.0
libtpu: 0.0.40
codegen_flags: <defaults>
</compile_context>

<pallas_src>
import functools
import math

import jax
import jax.numpy as jnp
from jax import lax
from jax.experimental import pallas as pl
from jax.experimental.pallas import tpu as pltpu


# ----------------------------- parameter setup ------------------------------
def _round_up(x: int, m: int) -> int:
    return ((x + m - 1) // m) * m


def fixed_embedding_table(c_in: int, d_model: int) -> jnp.ndarray:
    """Deterministic sinusoidal table, identical to FixedEmbedding.__init__."""
    position = jnp.arange(c_in, dtype=jnp.float32)[:, None]                 # [c_in, 1]
    div_term = jnp.exp(
        jnp.arange(0, d_model, 2, dtype=jnp.float32) * -(math.log(10000.0) / d_model)
    )                                                                       # [d_model//2]
    w = jnp.zeros((c_in, d_model), dtype=jnp.float32)
    w = w.at[:, 0::2].set(jnp.sin(position * div_term))
    w = w.at[:, 1::2].set(jnp.cos(position * div_term))
    return w


# --------------------------------- kernel -----------------------------------
def _temporal_embed_kernel(idx_ref, table_ref, out_ref, *, n_feat: int):
    ids = idx_ref[...]                       # [GF_pad, TF_BLK] int32, lane-dense DMA
    ids_t = ids.T                            # [TF_BLK, GF_pad]  one small XLU transpose
    tf = ids_t.shape[0]
    k = table_ref.shape[0]

    iota = lax.broadcasted_iota(jnp.int32, (tf, k), 1)      # vocab along lanes
    # Offset ranges in the block-diagonal vocabulary are disjoint, so boolean OR
    # is exactly the multi-hot sum; single cast at the end (no zeros init).
    mask = iota == ids_t[:, 0:1]
    for r in range(1, n_feat):               # static unroll, n_feat = G*F (<= 20)
        mask = mask | (iota == ids_t[:, r : r + 1])
    multi_hot = mask.astype(jnp.float32)

    # One MXU matmul == sum of all embedding gathers; output is lane-dense [TF_BLK, 128].
    out_ref[...] = jnp.dot(
        multi_hot, table_ref[...], preferred_element_type=jnp.float32
    )


# -------------------------------- wrapper -----------------------------------
def temporal_embedding(x, d_model: int = 32, freq: str = "h"):
    """x: int array [B, L, 5]; returns float32 [B, L, d_model]."""
    B, L, _ = x.shape

    sizes = {"minute": 4, "hour": 24, "weekday": 7, "day": 32, "month": 13}
    feats = [("month", 0), ("day", 1), ("weekday", 2), ("hour", 3)]
    if freq == "t":
        feats.append(("minute", 4))

    tables, offsets, cols = [], [], []
    off = 0
    for name, col in feats:
        tables.append(fixed_embedding_table(sizes[name], d_model))
        offsets.append(off)
        cols.append(col)
        off += sizes[name]
    base = jnp.concatenate(tables, axis=0)                  # [V, d_model] float32
    V = base.shape[0]
    F = len(feats)

    # Row-group factor: fold G consecutive rows into one folded row so the output
    # block is a lane-dense multiple-of-128 slab (row-major bit-identical layout).
    if d_model <= 128 and 128 % d_model == 0:
        G = 128 // d_model
    else:
        G = 1                                               # fallback: no folding
    D_out = G * d_model
    GF = G * F
    K_pad = _round_up(G * V, 128)

    # Block-diagonal table [K_pad, D_out]: copy j occupies rows [j*V,(j+1)*V) and
    # columns [j*d_model,(j+1)*d_model).  ~K_pad*D_out*4 bytes, VMEM-resident.
    table = jnp.zeros((K_pad, D_out), dtype=jnp.float32)
    for j in range(G):
        table = table.at[j * V : (j + 1) * V, j * d_model : (j + 1) * d_model].set(base)

    # Indices into the block-diagonal vocabulary.
    T = B * L
    idx = jnp.stack([x[:, :, c] for c in cols], axis=-1).astype(jnp.int32)   # [B,L,F]
    idx = idx + jnp.asarray(offsets, dtype=jnp.int32)[None, None, :]
    idx = idx.reshape(T, F)

    # Folded-row tiling: big tiles (512 folded = 2048 original rows), and at least
    # two grid steps for larger inputs so both v7x TensorCores are used.
    Tf = -(-T // G)
    if Tf <= 128:
        TF_BLK = _round_up(max(Tf, 1), 8)                    # single step, block == full
    else:
        TF_BLK = min(512, _round_up(-(-Tf // 2), 128))       # >=2 steps, 128-aligned
    Tf_pad = _round_up(Tf, TF_BLK)
    T_padG = Tf_pad * G

    if T_padG != T:
        idx = jnp.pad(idx, ((0, T_padG - T), (0, 0)))        # padded rows sliced off later
    idx = idx.reshape(Tf_pad, G, F) + (jnp.arange(G, dtype=jnp.int32) * V)[None, :, None]
    idx_t = idx.reshape(Tf_pad, GF).T                        # [GF, Tf_pad] lane-dense DMA

    GF_pad = _round_up(GF, 8)
    if GF_pad != GF:                                         # sublane-friendly padding;
        idx_t = jnp.pad(idx_t, ((0, GF_pad - GF), (0, 0)),   # value -1 never matches iota
                        constant_values=-1)

    grid = (Tf_pad // TF_BLK,)
    cost = pl.CostEstimate(
        flops=2 * Tf_pad * K_pad * D_out,
        transcendentals=0,
        bytes_accessed=int(idx_t.size) * 4 + int(table.size) * 4 + Tf_pad * D_out * 4,
    )

    out = pl.pallas_call(
        functools.partial(_temporal_embed_kernel, n_feat=GF),
        out_shape=jax.ShapeDtypeStruct((Tf_pad, D_out), jnp.float32),
        grid_spec=pltpu.PrefetchScalarGridSpec(
            num_scalar_prefetch=0,
            grid=grid,
            in_specs=[
                pl.BlockSpec((GF_pad, TF_BLK), lambda i: (0, i)),   # transposed idx block
                pl.BlockSpec((K_pad, D_out), lambda i: (0, 0)),     # whole table resident
            ],
            out_specs=pl.BlockSpec((TF_BLK, D_out), lambda i: (i, 0)),
        ),
        compiler_params=pltpu.CompilerParams(dimension_semantics=("parallel",)),
        cost_estimate=cost,
    )(idx_t, table)

    # Free row-major metadata reshapes: [Tf_pad, G*d] == [Tf_pad*G, d] bit-for-bit.
    return out.reshape(T_padG, d_model)[:T].reshape(B, L, d_model)


# ------------------------------ reference (jnp) ------------------------------
def temporal_embedding_ref(x, d_model: int = 32, freq: str = "h"):
    month = fixed_embedding_table(13, d_model)[x[:, :, 0]]
    day = fixed_embedding_table(32, d_model)[x[:, :, 1]]
    weekday = fixed_embedding_table(7, d_model)[x[:, :, 2]]
    hour = fixed_embedding_table(24, d_model)[x[:, :, 3]]
    out = hour + weekday + day + month
    if freq == "t":
        out = out + fixed_embedding_table(4, d_model)[x[:, :, 4]]
    return out


# ---------------------------------- main -------------------------------------
if __name__ == "__main__":
    key = jax.random.PRNGKey(0)
    B, L, d_model = 2, 8, 32
    ks = jax.random.split(key, 5)
    month = jax.random.randint(ks[0], (B, L), 0, 13)
    day = jax.random.randint(ks[1], (B, L), 0, 32)
    weekday = jax.random.randint(ks[2], (B, L), 0, 7)
    hour = jax.random.randint(ks[3], (B, L), 0, 24)
    minute = jax.random.randint(ks[4], (B, L), 0, 4)
    x = jnp.stack([month, day, weekday, hour, minute], axis=-1).astype(jnp.int32)

    # freq='h' (4 features)
    out_h = jax.block_until_ready(temporal_embedding(x, d_model=d_model, freq="h"))
    ref_h = temporal_embedding_ref(x, d_model=d_model, freq="h")
    assert out_h.shape == (B, L, d_model)
    assert jnp.allclose(out_h, ref_h, atol=1e-5, rtol=1e-5)

    # freq='t' (5 features, includes minute embedding)
    out_t = jax.block_until_ready(temporal_embedding(x, d_model=d_model, freq="t"))
    ref_t = temporal_embedding_ref(x, d_model=d_model, freq="t")
    assert jnp.allclose(out_t, ref_t, atol=1e-5, rtol=1e-5)

    print("KERNEL_OK")
</pallas_src>

<mosaic_0001>
module attributes {stable_mosaic.version = 11 : i64} {
  func.func @_temporal_embed_kernel(%arg0: i32, %arg1: memref<16x8xi32, #tpu.memory_space<vmem>>, %arg2: memref<384x128xf32, #tpu.memory_space<vmem>>, %arg3: memref<8x128xf32, #tpu.memory_space<vmem>>) attributes {dimension_semantics = [#tpu.dimension_semantics<parallel>], iteration_bounds = array<i64: 1>, scalar_prefetch = 0 : i64, scratch_operands = 0 : i64, tpu.core_type = #tpu.core_type<tc>, window_params = [{transform_indices = @transform_0, window_bounds = array<i64: 16, 8>}, {pipeline_mode = #tpu.pipeline_mode<synchronous>, transform_indices = @transform_1, window_bounds = array<i64: 384, 128>}, {transform_indices = @transform_2, window_bounds = array<i64: 8, 128>}]} {
    %c0 = arith.constant 0 : index
    %c0_0 = arith.constant 0 : index
    %0 = vector.load %arg1[%c0, %c0_0] : memref<16x8xi32, #tpu.memory_space<vmem>>, vector<16x8xi32>
    %1 = tpu.transpose %0, [1, 0] : vector<16x8xi32> -> vector<8x16xi32>
    %2 = tpu.iota {dimensions = array<i32: 1>} : vector<8x384xi32>
    %3 = vector.extract_strided_slice %1 {offsets = [0, 0], sizes = [8, 1], strides = [1, 1]} : vector<8x16xi32> to vector<8x1xi32>
    %4 = vector.broadcast %3 : vector<8x1xi32> to vector<8x384xi32>
    %5 = arith.cmpi eq, %2, %4 : vector<8x384xi32>
    %6 = vector.extract_strided_slice %1 {offsets = [0, 1], sizes = [8, 1], strides = [1, 1]} : vector<8x16xi32> to vector<8x1xi32>
    %7 = vector.broadcast %6 : vector<8x1xi32> to vector<8x384xi32>
    %8 = arith.cmpi eq, %2, %7 : vector<8x384xi32>
    %9 = arith.ori %5, %8 : vector<8x384xi1>
    %10 = vector.extract_strided_slice %1 {offsets = [0, 2], sizes = [8, 1], strides = [1, 1]} : vector<8x16xi32> to vector<8x1xi32>
    %11 = vector.broadcast %10 : vector<8x1xi32> to vector<8x384xi32>
    %12 = arith.cmpi eq, %2, %11 : vector<8x384xi32>
    %13 = arith.ori %9, %12 : vector<8x384xi1>
    %14 = vector.extract_strided_slice %1 {offsets = [0, 3], sizes = [8, 1], strides = [1, 1]} : vector<8x16xi32> to vector<8x1xi32>
    %15 = vector.broadcast %14 : vector<8x1xi32> to vector<8x384xi32>
    %16 = arith.cmpi eq, %2, %15 : vector<8x384xi32>
    %17 = arith.ori %13, %16 : vector<8x384xi1>
    %18 = vector.extract_strided_slice %1 {offsets = [0, 4], sizes = [8, 1], strides = [1, 1]} : vector<8x16xi32> to vector<8x1xi32>
    %19 = vector.broadcast %18 : vector<8x1xi32> to vector<8x384xi32>
    %20 = arith.cmpi eq, %2, %19 : vector<8x384xi32>
    %21 = arith.ori %17, %20 : vector<8x384xi1>
    %22 = vector.extract_strided_slice %1 {offsets = [0, 5], sizes = [8, 1], strides = [1, 1]} : vector<8x16xi32> to vector<8x1xi32>
    %23 = vector.broadcast %22 : vector<8x1xi32> to vector<8x384xi32>
    %24 = arith.cmpi eq, %2, %23 : vector<8x384xi32>
    %25 = arith.ori %21, %24 : vector<8x384xi1>
    %26 = vector.extract_strided_slice %1 {offsets = [0, 6], sizes = [8, 1], strides = [1, 1]} : vector<8x16xi32> to vector<8x1xi32>
    %27 = vector.broadcast %26 : vector<8x1xi32> to vector<8x384xi32>
    %28 = arith.cmpi eq, %2, %27 : vector<8x384xi32>
    %29 = arith.ori %25, %28 : vector<8x384xi1>
    %30 = vector.extract_strided_slice %1 {offsets = [0, 7], sizes = [8, 1], strides = [1, 1]} : vector<8x16xi32> to vector<8x1xi32>
    %31 = vector.broadcast %30 : vector<8x1xi32> to vector<8x384xi32>
    %32 = arith.cmpi eq, %2, %31 : vector<8x384xi32>
    %33 = arith.ori %29, %32 : vector<8x384xi1>
    %34 = vector.extract_strided_slice %1 {offsets = [0, 8], sizes = [8, 1], strides = [1, 1]} : vector<8x16xi32> to vector<8x1xi32>
    %35 = vector.broadcast %34 : vector<8x1xi32> to vector<8x384xi32>
    %36 = arith.cmpi eq, %2, %35 : vector<8x384xi32>
    %37 = arith.ori %33, %36 : vector<8x384xi1>
    %38 = vector.extract_strided_slice %1 {offsets = [0, 9], sizes = [8, 1], strides = [1, 1]} : vector<8x16xi32> to vector<8x1xi32>
    %39 = vector.broadcast %38 : vector<8x1xi32> to vector<8x384xi32>
    %40 = arith.cmpi eq, %2, %39 : vector<8x384xi32>
    %41 = arith.ori %37, %40 : vector<8x384xi1>
    %42 = vector.extract_strided_slice %1 {offsets = [0, 10], sizes = [8, 1], strides = [1, 1]} : vector<8x16xi32> to vector<8x1xi32>
    %43 = vector.broadcast %42 : vector<8x1xi32> to vector<8x384xi32>
    %44 = arith.cmpi eq, %2, %43 : vector<8x384xi32>
    %45 = arith.ori %41, %44 : vector<8x384xi1>
    %46 = vector.extract_strided_slice %1 {offsets = [0, 11], sizes = [8, 1], strides = [1, 1]} : vector<8x16xi32> to vector<8x1xi32>
    %47 = vector.broadcast %46 : vector<8x1xi32> to vector<8x384xi32>
    %48 = arith.cmpi eq, %2, %47 : vector<8x384xi32>
    %49 = arith.ori %45, %48 : vector<8x384xi1>
    %50 = vector.extract_strided_slice %1 {offsets = [0, 12], sizes = [8, 1], strides = [1, 1]} : vector<8x16xi32> to vector<8x1xi32>
    %51 = vector.broadcast %50 : vector<8x1xi32> to vector<8x384xi32>
    %52 = arith.cmpi eq, %2, %51 : vector<8x384xi32>
    %53 = arith.ori %49, %52 : vector<8x384xi1>
    %54 = vector.extract_strided_slice %1 {offsets = [0, 13], sizes = [8, 1], strides = [1, 1]} : vector<8x16xi32> to vector<8x1xi32>
    %55 = vector.broadcast %54 : vector<8x1xi32> to vector<8x384xi32>
    %56 = arith.cmpi eq, %2, %55 : vector<8x384xi32>
    %57 = arith.ori %53, %56 : vector<8x384xi1>
    %58 = vector.extract_strided_slice %1 {offsets = [0, 14], sizes = [8, 1], strides = [1, 1]} : vector<8x16xi32> to vector<8x1xi32>
    %59 = vector.broadcast %58 : vector<8x1xi32> to vector<8x384xi32>
    %60 = arith.cmpi eq, %2, %59 : vector<8x384xi32>
    %61 = arith.ori %57, %60 : vector<8x384xi1>
    %62 = vector.extract_strided_slice %1 {offsets = [0, 15], sizes = [8, 1], strides = [1, 1]} : vector<8x16xi32> to vector<8x1xi32>
    %63 = vector.broadcast %62 : vector<8x1xi32> to vector<8x384xi32>
    %64 = arith.cmpi eq, %2, %63 : vector<8x384xi32>
    %65 = arith.ori %61, %64 : vector<8x384xi1>
    %66 = arith.extui %65 : vector<8x384xi1> to vector<8x384xi32>
    %67 = arith.sitofp %66 : vector<8x384xi32> to vector<8x384xf32>
    %c0_1 = arith.constant 0 : index
    %c0_2 = arith.constant 0 : index
    %68 = vector.load %arg2[%c0_1, %c0_2] : memref<384x128xf32, #tpu.memory_space<vmem>>, vector<384x128xf32>
    %cst = arith.constant dense<0.000000e+00> : vector<8x128xf32>
    %69 = tpu.matmul %67, %68, %cst {dimension_numbers = #tpu.dot_dimension_numbers<[1], [0], [0], [1], [0, 0, 1, 1], [], []>} : vector<8x384xf32>, vector<384x128xf32>, vector<8x128xf32> -> vector<8x128xf32>
    %c0_3 = arith.constant 0 : index
    %c0_4 = arith.constant 0 : index
    %70 = vector.load %arg3[%c0_3, %c0_4] : memref<8x128xf32, #tpu.memory_space<vmem>>, vector<8x128xf32>
    tpu.vector_store %arg3[%c0_3, %c0_4], %69 {strides = array<i32>} : memref<8x128xf32, #tpu.memory_space<vmem>>, vector<8x128xf32>,
    return
  }
  func.func @transform_0(%arg0: i32) -> (i32, i32) {
    %c0_i32 = arith.constant 0 : i32
    %c0_i32_0 = arith.constant 0 : i32
    return %c0_i32, %arg0 : i32, i32
  }
  func.func @transform_1(%arg0: i32) -> (i32, i32) {
    %c0_i32 = arith.constant 0 : i32
    %c0_i32_0 = arith.constant 0 : i32
    %c0_i32_1 = arith.constant 0 : i32
    return %c0_i32, %c0_i32_0 : i32, i32
  }
  func.func @transform_2(%arg0: i32) -> (i32, i32) {
    %c0_i32 = arith.constant 0 : i32
    %c0_i32_0 = arith.constant 0 : i32
    return %arg0, %c0_i32 : i32, i32
  }
}

</mosaic_0001>

<bundles_post_ra>
// kernel: tpu_custom_call.1
= control target key start
LH: loop header
LB: loop body
LE: loop exit
PB: predicated region body
PF: predicated region fallthrough
CT: control target
= control target key end

     0   :  { %7 = vsyncpa [#allocation3], 0  ;;  %s739_s0 = inlined_call_operand.vmem [shape: s32[16,8], index: 0, kind: input, shape index: {}]   ;;  %s740_s1 = inlined_call_operand.hbm [shape: f32[384,128], index: 1, kind: input, shape index: {}]   ;;  %s741_s2 = inlined_call_operand.hbm [shape: f32[8,128], index: 2, kind: output, shape index: {}]  }
   0x1   :  { %8 = vsyncpa [#allocation4], 0  ;;  %s588_s9 = smov [#allocation2]  }
   0x2   :  { %s16_s10 = sshll.u32 %s588_s9, 4  ;;  %s17_s10 = int_to_ptr.vmem [resolvable:$true] %s16_s10 }
   0x3   :  { %s552_s11 = scalar_lea.vmem %s17_s10, 6144  ;;  %p557_p1 = scmp.lt.s32.totalorder %s17_s10, %s17_s10 }
   0x4   :  { %p553_p0 = scmp.ne.s32.totalorder %s17_s10, %s552_s11  ;;  %p558_p2 = scmp.lt.s32.totalorder %s552_s11, %s552_s11 }
   0x6   :  { %p559_p3 = por %p558_p2, %p557_p1 }
   0x8   :  { %p560_p4 = pnand %p559_p3, %p553_p0 }
   0xa   :  { %563 = shalt.err (!%p560_p4)
}
   0xb   :  { %s589_s12 = smov 128   ;;  %s590_s13 = smov 8  }
   0xc   :  { %22 = dma.hbm_to_vmem [thread:$0]  %s740_s1, 6144, %s17_s10, [#allocation3], %s589_s12, %s589_s12, %s590_s13  }
   0xd   :  { %584 = dma.done.wait [#allocation3], 6144  }
   0xe   :  { %585 = vsyncadd [#allocation3], 4294961152  ;;  %v591_v0 = vmov 0   ;;  %v26_v1 = vld [vmem:[%s739_s0] sm:$0xff]  ;;  %v27_v2 = vld [vmem:[%s739_s0 + $0x8] sm:$0xff]  ;;  %v592_v3 = vmov 2  }
   0xf   :  { %527 = vset.pattern.permute.xlu1 %v591_v0  ;;  %28 = vxpose.xlu0.b32.start [1/2] (short) (narrow) %v26_v1, 8  ;;  %v593_v5 = vmov 14   ;;  %v594_v6 = vmov 1   ;;  %v595_v7 = vmov 3   ;;  %v596_v8 = vmov 15   ;;  %v242_v14 = vld [vmem:[#allocation2 + $0xf8] sm:$0xff] }
  0x10   :  { %v597_v9 = vmov 4   ;;  %v598_v10 = vmov 5   ;;  %v599_v11 = vmov 6   ;;  %v600_v12 = vmov 7   ;;  %v258_v15 = vld [vmem:[#allocation2 + $0x178] sm:$0xff]  ;;  %v241_v18 = vld [vmem:[#allocation2 + $0xf0] sm:$0xff]  ;;  %418 = vmatprep.subr.mxu0 %v242_v14 }
  0x11   :  { %v601_v13 = vmov 8   ;;  %v226_v16 = vld [vmem:[#allocation2 + $0x78] sm:$0xff]  ;;  %v602_v17 = vmov 0.0   ;;  %v257_v19 = vld [vmem:[#allocation2 + $0x170] sm:$0xff]  ;;  %v603_v20 = vmov 9   ;;  %v240_v22 = vld [vmem:[#allocation2 + $0xe8] sm:$0xff] }
  0x12   :  { %470 = vmatprep.subr.mxu1 %v602_v17  ;;  %419 = vmatpush3.msra.mxu0 %v226_v16  ;;  %v225_v21 = vld [vmem:[#allocation2 + $0x70] sm:$0xff]  ;;  %v256_v23 = vld [vmem:[#allocation2 + $0x168] sm:$0xff]  ;;  %v239_v25 = vld [vmem:[#allocation2 + $0xe0] sm:$0xff]  ;;  %v604_v28 = vmov 10   ;;  %v605_v37 = vmov 11   ;;  %v606_v44 = vmov 12  }
  0x13   :  { %29 = vxpose.xlu0.b32.end [2/2] (short) (narrow) %v27_v2, 8  ;;  %471 = vmatpush3.msra.mxu1 %v258_v15  ;;  %v224_v24 = vld [vmem:[#allocation2 + $0x68] sm:$0xff]  ;;  %v255_v26 = vld [vmem:[#allocation2 + $0x160] sm:$0xff]  ;;  %v238_v29 = vld [vmem:[#allocation2 + $0xd8] sm:$0xff]  ;;  %v607_v51 = vmov 13   ;;  %vm608_vm0 = vmmov 0  }
  0x14   :  { %472 = vmatprep.subr.mxu1 %v602_v17  ;;  %420 = vmatprep.subr.mxu0 %v241_v18  ;;  %v223_v27 = vld [vmem:[#allocation2 + $0x60] sm:$0xff]  ;;  %v254_v30 = vld [vmem:[#allocation2 + $0x158] sm:$0xff]  ;;  %v237_v32 = vld [vmem:[#allocation2 + $0xd0] sm:$0xff]  ;;  %s609_s0 = smov [#allocation5]  }
  0x15   :  { %473 = vmatpush3.msra.mxu1 %v257_v19  ;;  %421 = vmatpush3.msra.mxu0 %v225_v21  ;;  %v222_v31 = vld [vmem:[#allocation2 + $0x58] sm:$0xff]  ;;  %v253_v33 = vld [vmem:[#allocation2 + $0x150] sm:$0xff]  ;;  %v236_v35 = vld [vmem:[#allocation2 + $0xc8] sm:$0xff]  ;;  %s406_s1 = sshll.u32 %s609_s0, 4  ;;  %s407_s1 = int_to_ptr.vmem [resolvable:$true] %s406_s1 }
  0x16   :  { %474 = vmatprep.subr.mxu1 %v602_v17  ;;  %422 = vmatprep.subr.mxu0 %v240_v22  ;;  %v221_v34 = vld [vmem:[#allocation2 + $0x50] sm:$0xff]  ;;  %v252_v36 = vld [vmem:[#allocation2 + $0x148] sm:$0xff]  ;;  %v235_v39 = vld [vmem:[#allocation2 + $0xc0] sm:$0xff]  ;;  %s564_s20 = scalar_lea.vmem %s407_s1, 128  ;;  %p569_p6 = scmp.lt.s32.totalorder %s407_s1, %s407_s1 }
  0x17   :  { %475 = vmatpush3.msra.mxu1 %v256_v23  ;;  %423 = vmatpush3.msra.mxu0 %v224_v24  ;;  %v220_v38 = vld [vmem:[#allocation2 + $0x48] sm:$0xff]  ;;  %v251_v40 = vld [vmem:[#allocation2 + $0x140] sm:$0xff]  ;;  %v234_v42 = vld [vmem:[#allocation2 + $0xb8] sm:$0xff]  ;;  %p565_p5 = scmp.ne.s32.totalorder %s407_s1, %s564_s20  ;;  %p570_p7 = scmp.lt.s32.totalorder %s564_s20, %s564_s20 }
  0x18   :  { %476 = vmatprep.subr.mxu1 %v602_v17  ;;  %424 = vmatprep.subr.mxu0 %v239_v25  ;;  %v219_v41 = vld [vmem:[#allocation2 + $0x40] sm:$0xff]  ;;  %v250_v43 = vld [vmem:[#allocation2 + $0x138] sm:$0xff]  ;;  %v233_v46 = vld [vmem:[#allocation2 + $0xb0] sm:$0xff] }
  0x19   :  { %477 = vmatpush3.msra.mxu1 %v255_v26  ;;  %425 = vmatpush3.msra.mxu0 %v223_v27  ;;  %v218_v45 = vld [vmem:[#allocation2 + $0x38] sm:$0xff]  ;;  %v249_v47 = vld [vmem:[#allocation2 + $0x130] sm:$0xff]  ;;  %v232_v49 = vld [vmem:[#allocation2 + $0xa8] sm:$0xff]  ;;  %p571_p8 = por %p570_p7, %p569_p6 }
  0x1a   :  { %478 = vmatprep.subr.mxu1 %v602_v17  ;;  %426 = vmatprep.subr.mxu0 %v238_v29  ;;  %v217_v48 = vld [vmem:[#allocation2 + $0x30] sm:$0xff]  ;;  %v248_v50 = vld [vmem:[#allocation2 + $0x128] sm:$0xff]  ;;  %v231_v53 = vld [vmem:[#allocation2 + $0xa0] sm:$0xff] }
  0x1b   :  { %479 = vmatpush3.msra.mxu1 %v254_v30  ;;  %427 = vmatpush3.msra.mxu0 %v222_v31  ;;  %v216_v52 = vld [vmem:[#allocation2 + $0x28] sm:$0xff]  ;;  %v247_v54 = vld [vmem:[#allocation2 + $0x120] sm:$0xff]  ;;  %v230_v56 = vld [vmem:[#allocation2 + $0x98] sm:$0xff]  ;;  %p572_p9 = pnand %p571_p8, %p565_p5 }
  0x1c   :  { %480 = vmatprep.subr.mxu1 %v602_v17  ;;  %428 = vmatprep.subr.mxu0 %v237_v32  ;;  %v215_v55 = vld [vmem:[#allocation2 + $0x20] sm:$0xff]  ;;  %v246_v57 = vld [vmem:[#allocation2 + $0x118] sm:$0xff]  ;;  %v229_v59 = vld [vmem:[#allocation2 + $0x90] sm:$0xff] }
  0x1d   :  { %481 = vmatpush3.msra.mxu1 %v253_v33  ;;  %429 = vmatpush3.msra.mxu0 %v221_v34  ;;  %v214_v58 = vld [vmem:[#allocation2 + $0x18] sm:$0xff]  ;;  %v245_v60 = vld [vmem:[#allocation2 + $0x110] sm:$0xff]  ;;  %v228_v62 = vld [vmem:[#allocation2 + $0x88] sm:$0xff] }
  0x1e   :  { %482 = vmatprep.subr.mxu1 %v602_v17  ;;  %430 = vmatprep.subr.mxu0 %v236_v35  ;;  %v213_v61 = vld [vmem:[#allocation2 + $0x10] sm:$0xff]  ;;  %v244_v63 = vld [vmem:[#allocation2 + $0x108] sm:$0xff]  ;;  %v227_v1 = vld [vmem:[#allocation2 + $0x80] sm:$0xff] }
  0x1f   :  { %483 = vmatpush3.msra.mxu1 %v252_v36  ;;  %431 = vmatpush3.msra.mxu0 %v220_v38  ;;  %v212_v0 = vld [vmem:[#allocation2 + $0x8] sm:$0xff]  ;;  %v243_v2 = vld [vmem:[#allocation2 + $0x100] sm:$0xff] }
  0x20   :  { %484 = vmatprep.subr.mxu1 %v602_v17  ;;  %432 = vmatprep.subr.mxu0 %v235_v39 }
  0x21   :  { %485 = vmatpush3.msra.mxu1 %v251_v40  ;;  %433 = vmatpush3.msra.mxu0 %v219_v41 }
  0x22   :  { %486 = vmatprep.subr.mxu1 %v602_v17  ;;  %434 = vmatprep.subr.mxu0 %v234_v42 }
  0x23   :  { %487 = vmatpush3.msra.mxu1 %v250_v43  ;;  %435 = vmatpush3.msra.mxu0 %v218_v45 }
  0x24   :  { %488 = vmatprep.subr.mxu1 %v602_v17  ;;  %436 = vmatprep.subr.mxu0 %v233_v46 }
  0x25   :  { %489 = vmatpush3.msra.mxu1 %v249_v47  ;;  %437 = vmatpush3.msra.mxu0 %v217_v48 }
  0x26   :  { %490 = vmatprep.subr.mxu1 %v602_v17  ;;  %438 = vmatprep.subr.mxu0 %v232_v49 }
  0x27   :  { %491 = vmatpush3.msra.mxu1 %v248_v50  ;;  %439 = vmatpush3.msra.mxu0 %v216_v52 }
  0x28   :  { %492 = vmatprep.subr.mxu1 %v602_v17  ;;  %440 = vmatprep.subr.mxu0 %v231_v53 }
  0x29   :  { %493 = vmatpush3.msra.mxu1 %v247_v54  ;;  %441 = vmatpush3.msra.mxu0 %v215_v55 }
  0x2a   :  { %494 = vmatprep.subr.mxu1 %v602_v17  ;;  %442 = vmatprep.subr.mxu0 %v230_v56 }
  0x2b   :  { %495 = vmatpush3.msra.mxu1 %v246_v57  ;;  %443 = vmatpush3.msra.mxu0 %v214_v58 }
  0x2c   :  { %496 = vmatprep.subr.mxu1 %v602_v17  ;;  %444 = vmatprep.subr.mxu0 %v229_v59 }
  0x2d   :  { %497 = vmatpush3.msra.mxu1 %v245_v60  ;;  %445 = vmatpush3.msra.mxu0 %v213_v61 }
  0x2e   :  { %498 = vmatprep.subr.mxu1 %v602_v17  ;;  %446 = vmatprep.subr.mxu0 %v228_v62 }
  0x2f   :  { %499 = vmatpush3.msra.mxu1 %v244_v63  ;;  %447 = vmatpush3.msra.mxu0 %v212_v0 }
  0x30   :  { %500 = vmatprep.subr.mxu1 %v602_v17  ;;  %448 = vmatprep.subr.mxu0 %v227_v1 }
  0x31   :  { %501 = vmatpush3.msra.mxu1 %v243_v2  ;;  %502 = vmatprep.mubr.msk.f32.mxu1 %vm608_vm0, %v602_v17 }
  0x3c   :  { %529 = vset.pattern.permute.xlu0 %v592_v3  ;;  %v211_v3 = vld [vmem:[#allocation2] sm:$0xff] }
  0x3d   :  { %449 = vmatpush3.msra.mxu0 %v211_v3 }
  0x8b   :  { %v634_v4 = vpop.trf.xlu0 }
  0x8c   :  { %80 = vperm.xlu0 %529, %v634_v4   ;;  %65 = vperm.xlu1 %527, %v634_v4  }
  0x90   :  { %541 = vset.pattern.permute.xlu0 %v593_v5  ;;  %528 = vset.pattern.permute.xlu1 %v594_v6 }
  0x91   :  { %188 = vperm.xlu0 %541, %v634_v4   ;;  %71 = vperm.xlu1 %528, %v634_v4  }
  0x95   :  { %530 = vset.pattern.permute.xlu1 %v595_v7  ;;  %543 = vset.pattern.permute.xlu0 %v596_v8  ;;  %v60_v7 = vlaneseq }
  0x96   :  { %89 = vperm.xlu1 %530, %v634_v4  }
  0x9a   :  { %531 = vset.pattern.permute.xlu1 %v597_v9  ;;  %v671_v9 = vand.u32 127, %v60_v7 }
  0x9b   :  { %98 = vperm.xlu1 %531, %v634_v4  }
  0x9f   :  { %532 = vset.pattern.permute.xlu1 %v598_v10 }
  0xa0   :  { %107 = vperm.xlu1 %532, %v634_v4  }
  0xa4   :  { %533 = vset.pattern.permute.xlu1 %v599_v11  ;;  %v674_v11 = vadd.s32 128, %v671_v9 }
  0xa5   :  { %116 = vperm.xlu1 %533, %v634_v4  }
  0xa9   :  { %534 = vset.pattern.permute.xlu1 %v600_v12  ;;  %v677_v12 = vadd.s32 256, %v671_v9 }
  0xaa   :  { %125 = vperm.xlu1 %534, %v634_v4  }
  0xae   :  { %535 = vset.pattern.permute.xlu1 %v601_v13 }
  0xaf   :  { %134 = vperm.xlu1 %535, %v634_v4  }
  0xb3   :  { %536 = vset.pattern.permute.xlu1 %v603_v20 }
  0xb4   :  { %143 = vperm.xlu1 %536, %v634_v4  }
  0xb8   :  { %537 = vset.pattern.permute.xlu1 %v604_v28 }
  0xb9   :  { %152 = vperm.xlu1 %537, %v634_v4  }
  0xbd   :  { %538 = vset.pattern.permute.xlu1 %v605_v37 }
  0xbe   :  { %161 = vperm.xlu1 %538, %v634_v4  }
  0xc2   :  { %539 = vset.pattern.permute.xlu1 %v606_v44 }
  0xc3   :  { %170 = vperm.xlu1 %539, %v634_v4  }
  0xc7   :  { %540 = vset.pattern.permute.xlu1 %v607_v51 }
  0xc8   :  { %179 = vperm.xlu1 %540, %v634_v4  }
  0xcc   :  { %542 = vset.pattern.permute.xlu1 %v596_v8 }
  0xcd   :  { %197 = vperm.xlu1 %542, %v634_v4  }
 0x107   :  { %v66_v4 = vpop.permute.xlu1 %65  ;;  %v81_v13 = vpop.permute.xlu0 %80 }
 0x108   :  { %vm67_vm3 = vcmp.eq.s32.totalorder %v671_v9, %v66_v4  ;;  %vm68_vm5 = vcmp.eq.s32.totalorder %v674_v11, %v66_v4  ;;  %vm69_vm7 = vcmp.eq.s32.totalorder %v677_v12, %v66_v4  ;;  %vm82_vm9 = vcmp.eq.s32.totalorder %v671_v9, %v81_v13 }
 0x109   :  { %vm83_vm11 = vcmp.eq.s32.totalorder %v674_v11, %v81_v13  ;;  %vm84_vm14 = vcmp.eq.s32.totalorder %v677_v12, %v81_v13 }
 0x10c   :  { %v72_v5 = vpop.permute.xlu1 %71  ;;  %v189_v23 = vpop.permute.xlu0 %188 }
 0x10d   :  { %vm73_vm1 = vcmp.eq.s32.totalorder %v671_v9, %v72_v5  ;;  %vm74_vm2 = vcmp.eq.s32.totalorder %v674_v11, %v72_v5  ;;  %vm75_vm4 = vcmp.eq.s32.totalorder %v677_v12, %v72_v5 }
 0x10e   :  { %vm76_vm6 = vmor %vm67_vm3, %vm73_vm1 }
 0x10f   :  { %vm77_vm8 = vmor %vm68_vm5, %vm74_vm2 }
 0x110   :  { %vm78_vm10 = vmor %vm69_vm7, %vm75_vm4 }
 0x111   :  { %v90_v6 = vpop.permute.xlu1 %89  ;;  %vm85_vm12 = vmor %vm76_vm6, %vm82_vm9 }
 0x112   :  { %vm91_vm13 = vcmp.eq.s32.totalorder %v671_v9, %v90_v6  ;;  %vm86_vm15 = vmor %vm77_vm8, %vm83_vm11  ;;  %vm92_vm0 = vcmp.eq.s32.totalorder %v674_v11, %v90_v6  ;;  %vm93_vm3 = vcmp.eq.s32.totalorder %v677_v12, %v90_v6 }
 0x113   :  { %vm87_vm1 = vmor %vm78_vm10, %vm84_vm14 }
 0x114   :  { %vm94_vm2 = vmor %vm85_vm12, %vm91_vm13 }
 0x115   :  { %vm95_vm4 = vmor %vm86_vm15, %vm92_vm0 }
 0x116   :  { %v99_v8 = vpop.permute.xlu1 %98  ;;  %vm96_vm6 = vmor %vm87_vm1, %vm93_vm3 }
 0x117   :  { %vm100_vm5 = vcmp.eq.s32.totalorder %v671_v9, %v99_v8  ;;  %vm101_vm7 = vcmp.eq.s32.totalorder %v674_v11, %v99_v8  ;;  %vm102_vm9 = vcmp.eq.s32.totalorder %v677_v12, %v99_v8 }
 0x118   :  { %vm103_vm8 = vmor %vm94_vm2, %vm100_vm5 }
 0x119   :  { %vm104_vm10 = vmor %vm95_vm4, %vm101_vm7 }
 0x11a   :  { %vm105_vm12 = vmor %vm96_vm6, %vm102_vm9 }
 0x11b   :  { %v108_v10 = vpop.permute.xlu1 %107 }
 0x11c   :  { %vm109_vm11 = vcmp.eq.s32.totalorder %v671_v9, %v108_v10  ;;  %vm110_vm14 = vcmp.eq.s32.totalorder %v674_v11, %v108_v10  ;;  %vm111_vm13 = vcmp.eq.s32.totalorder %v677_v12, %v108_v10 }
 0x11d   :  { %vm112_vm0 = vmor %vm103_vm8, %vm109_vm11 }
 0x11e   :  { %vm113_vm1 = vmor %vm104_vm10, %vm110_vm14 }
 0x11f   :  { %vm114_vm2 = vmor %vm105_vm12, %vm111_vm13 }
 0x120   :  { %v117_v14 = vpop.permute.xlu1 %116 }
 0x121   :  { %vm118_vm15 = vcmp.eq.s32.totalorder %v671_v9, %v117_v14  ;;  %vm119_vm3 = vcmp.eq.s32.totalorder %v674_v11, %v117_v14  ;;  %vm120_vm5 = vcmp.eq.s32.totalorder %v677_v12, %v117_v14 }
 0x122   :  { %vm121_vm4 = vmor %vm112_vm0, %vm118_vm15 }
 0x123   :  { %vm122_vm6 = vmor %vm113_vm1, %vm119_vm3 }
 0x124   :  { %vm123_vm8 = vmor %vm114_vm2, %vm120_vm5 }
 0x125   :  { %v126_v15 = vpop.permute.xlu1 %125 }
 0x126   :  { %vm127_vm7 = vcmp.eq.s32.totalorder %v671_v9, %v126_v15  ;;  %vm128_vm9 = vcmp.eq.s32.totalorder %v674_v11, %v126_v15  ;;  %vm129_vm11 = vcmp.eq.s32.totalorder %v677_v12, %v126_v15 }
 0x127   :  { %vm130_vm10 = vmor %vm121_vm4, %vm127_vm7 }
 0x128   :  { %vm131_vm12 = vmor %vm122_vm6, %vm128_vm9 }
 0x129   :  { %vm132_vm0 = vmor %vm123_vm8, %vm129_vm11 }
 0x12a   :  { %v135_v16 = vpop.permute.xlu1 %134 }
 0x12b   :  { %vm136_vm14 = vcmp.eq.s32.totalorder %v671_v9, %v135_v16  ;;  %vm137_vm13 = vcmp.eq.s32.totalorder %v674_v11, %v135_v16  ;;  %vm138_vm15 = vcmp.eq.s32.totalorder %v677_v12, %v135_v16 }
 0x12c   :  { %vm139_vm1 = vmor %vm130_vm10, %vm136_vm14 }
 0x12d   :  { %vm140_vm2 = vmor %vm131_vm12, %vm137_vm13 }
 0x12e   :  { %vm141_vm4 = vmor %vm132_vm0, %vm138_vm15 }
 0x12f   :  { %v144_v18 = vpop.permute.xlu1 %143 }
 0x130   :  { %vm145_vm3 = vcmp.eq.s32.totalorder %v671_v9, %v144_v18  ;;  %vm146_vm5 = vcmp.eq.s32.totalorder %v674_v11, %v144_v18  ;;  %vm147_vm7 = vcmp.eq.s32.totalorder %v677_v12, %v144_v18 }
 0x131   :  { %vm148_vm6 = vmor %vm139_vm1, %vm145_vm3 }
 0x132   :  { %vm149_vm8 = vmor %vm140_vm2, %vm146_vm5 }
 0x133   :  { %vm150_vm10 = vmor %vm141_vm4, %vm147_vm7 }
 0x134   :  { %v153_v19 = vpop.permute.xlu1 %152 }
 0x135   :  { %vm154_vm9 = vcmp.eq.s32.totalorder %v671_v9, %v153_v19  ;;  %vm155_vm11 = vcmp.eq.s32.totalorder %v674_v11, %v153_v19  ;;  %vm156_vm14 = vcmp.eq.s32.totalorder %v677_v12, %v153_v19 }
 0x136   :  { %vm157_vm12 = vmor %vm148_vm6, %vm154_vm9 }
 0x137   :  { %vm158_vm0 = vmor %vm149_vm8, %vm155_vm11 }
 0x138   :  { %vm159_vm1 = vmor %vm150_vm10, %vm156_vm14 }
 0x139   :  { %v162_v20 = vpop.permute.xlu1 %161 }
 0x13a   :  { %vm163_vm13 = vcmp.eq.s32.totalorder %v671_v9, %v162_v20  ;;  %vm164_vm15 = vcmp.eq.s32.totalorder %v674_v11, %v162_v20  ;;  %vm165_vm3 = vcmp.eq.s32.totalorder %v677_v12, %v162_v20 }
 0x13b   :  { %vm166_vm2 = vmor %vm157_vm12, %vm163_vm13 }
 0x13c   :  { %vm167_vm4 = vmor %vm158_vm0, %vm164_vm15 }
 0x13d   :  { %vm168_vm6 = vmor %vm159_vm1, %vm165_vm3  ;;  %vm191_vm1 = vcmp.eq.s32.totalorder %v674_v11, %v189_v23 }
 0x13e   :  { %v171_v21 = vpop.permute.xlu1 %170 }
 0x13f   :  { %vm172_vm5 = vcmp.eq.s32.totalorder %v671_v9, %v171_v21  ;;  %vm174_vm7 = vcmp.eq.s32.totalorder %v677_v12, %v171_v21  ;;  %vm173_vm9 = vcmp.eq.s32.totalorder %v674_v11, %v171_v21 }
 0x140   :  { %vm175_vm8 = vmor %vm166_vm2, %vm172_vm5  ;;  %vm192_vm2 = vcmp.eq.s32.totalorder %v677_v12, %v189_v23 }
 0x141   :  { %vm177_vm11 = vmor %vm168_vm6, %vm174_vm7 }
 0x142   :  { %vm176_vm13 = vmor %vm167_vm4, %vm173_vm9 }
 0x143   :  { %v180_v22 = vpop.permute.xlu1 %179 }
 0x144   :  { %vm181_vm10 = vcmp.eq.s32.totalorder %v671_v9, %v180_v22  ;;  %vm182_vm14 = vcmp.eq.s32.totalorder %v674_v11, %v180_v22  ;;  %vm183_vm12 = vcmp.eq.s32.totalorder %v677_v12, %v180_v22 }
 0x145   :  { %vm721_vm0 = vmor %vm175_vm8, %vm181_vm10  ;;  %vm190_vm10 = vcmp.eq.s32.totalorder %v671_v9, %v189_v23 }
 0x146   :  { %vm186_vm15 = vmor %vm177_vm11, %vm183_vm12 }
 0x147   :  { %vm185_vm3 = vmor %vm176_vm13, %vm182_vm14 }
 0x148   :  { %v198_v25 = vpop.permute.xlu1 %197  ;;  %vm194_vm5 = vmor %vm185_vm3, %vm191_vm1 }
 0x149   :  { %vm201_vm7 = vcmp.eq.s32.totalorder %v677_v12, %v198_v25  ;;  %vm200_vm6 = vcmp.eq.s32.totalorder %v674_v11, %v198_v25  ;;  %vm195_vm4 = vmor %vm186_vm15, %vm192_vm2  ;;  %vm199_vm9 = vcmp.eq.s32.totalorder %v671_v9, %v198_v25 }
 0x14a   :  { %vm203_vm8 = vmor %vm194_vm5, %vm200_vm6 }
 0x14b   :  { %v416_v26 = vsel %vm203_vm8, 1.0, %v602_v17  ;;  %vm204_vm11 = vmor %vm195_vm4, %vm201_vm7 }
 0x14c   :  { %323 = vmatprep.mubr.f32.mxu0 %v416_v26  ;;  %v417_v27 = vsel %vm204_vm11, 1.0, %v602_v17  ;;  %vm193_vm14 = vmor %vm721_vm0, %vm190_vm10 }
 0x14d   :  { %503 = vmatmul.mubr.f32.vlgmr.msra.gmra.mxu1 %v417_v27  ;;  %vm202_vm12 = vmor %vm193_vm14, %vm199_vm9 }
 0x14e   :  { %v415_v28 = vsel %vm202_vm12, 1.0, %v602_v17 }
 0x14f   :  { %324 = vmatmul.mubr.f32.vlgmr.msra.gmra.mxu0 %v415_v28 }
 0x20d   :  { %v395_v29 = vpop.f32.mrf.mxu1 }
 0x20f   :  { %v450_v30 = vpop.f32.mrf.mxu0  ;;  %v504_v31 = vpop.f32.mrf.mxu1 }
 0x211   :  { %v451_v32 = vpop.f32.mrf.mxu0 }
 0x212   :  { %v452_v33 = vadd.f32 %v451_v32, %v450_v30 }
 0x214   :  { %v396_v34 = vadd.f32 %v452_v33, %v395_v29 }
 0x216   :  { %399 = vst [vmem:[#allocation5] sm:$0xff] %v396_v34 }
 0x217   :  { %575 = shalt.err (!%p572_p9)
}
 0x218   :  { %409 = dma.vmem_to_hbm [thread:$0]  %s407_s1, 128, %s741_s2, [#allocation4]  }
 0x219   :  { %586 = dma.done.wait [#allocation4], 128  }
 0x21a   :  { %587 = vsyncadd [#allocation4], 4294967168 }
 0x21b   :  { %413 = vsyncpa [#allocation3], 1 }
 0x21c   :  { %414 = vsyncpa [#allocation4], 1 }

</bundles_post_ra>
